<compile_context>
chip_gen: v6e
topology: v6e:2x2x1
jax: 0.10.0
libtpu: 0.0.40
codegen_flags: <defaults>
</compile_context>

<pallas_src>
import jax
import jax.numpy as jnp
from jax import lax
from jax.experimental import pallas as pl
from jax.experimental.pallas import tpu as pltpu


def _temporal_attention_kernel(x_ref, a_ref, b3_ref, bet_ref, vet_ref, out_ref):
    # x_ref  : (Bb*T, N*F)  x[b, n, f, t] at row (b*T + t), col (n*F + f)
    # a_ref  : (N*F, N)     A[n*F + f, m]  = U1[n] * U2[f, m]
    # b3_ref : (N*F, N)     B3[n*F + f, m] = U3[f] * (n == m)
    # bet_ref: (T, T)       be[0].T
    # vet_ref: (T, T)       Ve.T
    # out_ref: (Bb*T, T)    out[b*T + j, i] = softmax(e, dim=1)[b, i, j]
    t = out_ref.shape[-1]
    bb = x_ref.shape[0] // t
    n = a_ref.shape[-1]

    xmat = x_ref[...]                                       # (Bb*T, N*F)

    # lhs[(b,s), m] = sum_{n,f} x[b,n,f,s] U1[n] U2[f,m]            (MXU)
    lhs2 = jnp.dot(xmat, a_ref[...], preferred_element_type=jnp.float32)
    # rhsT[(b,t), m] = rhs[b,m,t] = sum_f x[b,m,f,t] U3[f]          (MXU)
    rhs2 = jnp.dot(xmat, b3_ref[...], preferred_element_type=jnp.float32)

    lhs3 = lhs2.reshape(bb, t, n)                            # (Bb, Ts, N)
    rhs3 = rhs2.reshape(bb, t, n)                            # (Bb, Tt, N)

    # productT[b, j, k] = product[b, k, j] = sum_n lhs[b,k,n] rhs[b,n,j]
    product_t = lax.dot_general(
        rhs3, lhs3,
        dimension_numbers=(((2,), (2,)), ((0,), (0,))),
        preferred_element_type=jnp.float32)                  # (Bb, Tj, Tk)

    # sigmoid(product + be), transposed layout: + be[k, j] == + be.T[j, k]
    s_t = jax.nn.sigmoid(product_t + bet_ref[...])           # (Bb, Tj, Tk)
    s2 = s_t.reshape(bb * t, t)                              # rows (b, j), cols k

    # e[(b,j), i] = sum_k Ve[i,k] * sigmoid(product + be)[b,k,j]    (MXU)
    e2 = jnp.dot(s2, vet_ref[...], preferred_element_type=jnp.float32)

    # softmax over i  (== torch.softmax(e, dim=1))
    e2 = e2 - jnp.max(e2, axis=-1, keepdims=True)
    p = jnp.exp(e2)
    denom = jnp.sum(p, axis=-1, keepdims=True)
    out_ref[...] = (p * pl.reciprocal(denom, approx=True)).astype(out_ref.dtype)


def _pick_block_b(B, T, row_elems, elt_bytes):
    """Pick the batch-block size.

    Prefer 2 grid blocks (even 'parallel' split -> both TensorCores on v7x)
    when the resulting row block stays sublane-aligned; cap each x block at
    ~8 MiB (Pallas double-buffers it) for v7x's smaller VMEM; otherwise take
    the whole batch in a single step.
    """
    bb = B
    if B % 2 == 0 and ((B // 2) * T) % 8 == 0:
        bb = B // 2
    cap_rows = max(T, (8 << 20) // max(1, row_elems * elt_bytes))
    while bb * T > cap_rows and bb % 2 == 0 and ((bb // 2) * T) % 8 == 0:
        bb //= 2
    return bb


def temporal_attention(x, u1, u2, u3, be, ve, *, block_b=None):
    """x: (B, N, F, T).  Returns (B, T, T) float32 (== torch forward)."""
    B, N, F, T = x.shape
    cdtype = x.dtype  # keep x's dtype (bf16 stays bf16) for the DMA / MXU operand

    # Fold U1/U2 and U3 into (N*F, N) weight matrices (computed once by XLA).
    u1f = u1.astype(jnp.float32)
    u2f = u2.astype(jnp.float32)
    u3f = u3.astype(jnp.float32)
    a_mat = (u1f[:, None, None] * u2f[None, :, :]).reshape(N * F, N)
    b3_mat = jnp.kron(jnp.eye(N, dtype=jnp.float32), u3f.reshape(F, 1))
    a_mat = a_mat.astype(cdtype)
    b3_mat = b3_mat.astype(cdtype)

    bet = be.reshape(T, T).T.astype(jnp.float32)   # be[0].T
    vet = ve.T.astype(jnp.float32)                 # Ve.T

    # Lane-dense x layout: (B*T, N*F), row (b, t), col (n, f).
    xmat = jnp.transpose(x, (0, 3, 1, 2)).reshape(B * T, N * F)

    if block_b is None:
        block_b = _pick_block_b(B, T, N * F, jnp.dtype(cdtype).itemsize)
    num_blocks = B // block_b
    rows = block_b * T

    out2 = pl.pallas_call(
        _temporal_attention_kernel,
        out_shape=jax.ShapeDtypeStruct((B * T, T), jnp.float32),
        grid_spec=pltpu.PrefetchScalarGridSpec(
            num_scalar_prefetch=0,
            grid=(num_blocks,),
            in_specs=[
                pl.BlockSpec((rows, N * F), lambda i: (i, 0)),
                pl.BlockSpec((N * F, N), lambda i: (0, 0)),
                pl.BlockSpec((N * F, N), lambda i: (0, 0)),
                pl.BlockSpec((T, T), lambda i: (0, 0)),
                pl.BlockSpec((T, T), lambda i: (0, 0)),
            ],
            out_specs=pl.BlockSpec((rows, T), lambda i: (i, 0)),
        ),
        compiler_params=pltpu.CompilerParams(
            dimension_semantics=("parallel",)),
    )(xmat, a_mat, b3_mat, bet, vet)

    # out2[b*T + j, i] == softmax(e, dim=1)[b, i, j]  ->  (B, T, T)
    return out2.reshape(B, T, T).transpose(0, 2, 1)


def _reference(x, u1, u2, u3, be, ve):
    # Pure-JAX mirror of the PyTorch forward (for correctness checking).
    lhs = jnp.einsum('bnft,n->btf', x, u1)
    lhs = jnp.einsum('btf,fm->btm', lhs, u2)          # (B, T, N)
    rhs = jnp.einsum('f,bnft->bnt', u3, x)            # (B, N, T)
    product = jnp.einsum('bsn,bnt->bst', lhs, rhs)    # (B, T, T)
    e = jnp.einsum('ik,bkj->bij', ve, jax.nn.sigmoid(product + be))
    return jax.nn.softmax(e, axis=1)


if __name__ == "__main__":
    # Small, module-consistent shapes.
    B, N, F, T = 2, 16, 4, 8   # batch, num_nodes, in_channels, num_time_steps

    key = jax.random.PRNGKey(0)
    kx, k1, k2, k3, k4, k5 = jax.random.split(key, 6)

    x = jax.random.normal(kx, (B, N, F, T), dtype=jnp.float32)

    # Deterministic parameter init (mirrors reset_parameters' intent).
    U1 = jax.random.uniform(k1, (N,), dtype=jnp.float32)                          # uniform_
    U2 = jax.random.normal(k2, (F, N), dtype=jnp.float32) * (2.0 / (F + N))**0.5  # xavier_normal_
    U3 = jax.random.uniform(k3, (F,), dtype=jnp.float32)                          # uniform_
    be = jax.random.normal(k4, (1, T, T), dtype=jnp.float32) * (1.0 / T)**0.5     # xavier_normal_
    Ve = jax.random.normal(k5, (T, T), dtype=jnp.float32) * (1.0 / T)**0.5        # xavier_normal_

    out = temporal_attention(x, U1, U2, U3, be, Ve)
    out = jax.block_until_ready(out)

    ref = _reference(x, U1, U2, U3, be, Ve)
    assert out.shape == (B, T, T)
    # tolerance loosened slightly vs f32-exact because of the EUP approximate
    # reciprocal used for the softmax normalization.
    assert jnp.allclose(out, ref, rtol=1e-3, atol=1e-3), "mismatch vs reference"

    print("KERNEL_OK")
</pallas_src>

<mosaic_0001>
module attributes {stable_mosaic.version = 11 : i64} {
  func.func @_temporal_attention_kernel(%arg0: i32, %arg1: memref<8x64xf32, #tpu.memory_space<vmem>>, %arg2: memref<64x16xf32, #tpu.memory_space<vmem>>, %arg3: memref<64x16xf32, #tpu.memory_space<vmem>>, %arg4: memref<8x8xf32, #tpu.memory_space<vmem>>, %arg5: memref<8x8xf32, #tpu.memory_space<vmem>>, %arg6: memref<8x8xf32, #tpu.memory_space<vmem>>) attributes {dimension_semantics = [#tpu.dimension_semantics<parallel>], iteration_bounds = array<i64: 2>, scalar_prefetch = 0 : i64, scratch_operands = 0 : i64, tpu.core_type = #tpu.core_type<tc>, window_params = [{transform_indices = @transform_0, window_bounds = array<i64: 8, 64>}, {pipeline_mode = #tpu.pipeline_mode<synchronous>, transform_indices = @transform_1, window_bounds = array<i64: 64, 16>}, {pipeline_mode = #tpu.pipeline_mode<synchronous>, transform_indices = @transform_2, window_bounds = array<i64: 64, 16>}, {pipeline_mode = #tpu.pipeline_mode<synchronous>, transform_indices = @transform_3, window_bounds = array<i64: 8, 8>}, {pipeline_mode = #tpu.pipeline_mode<synchronous>, transform_indices = @transform_4, window_bounds = array<i64: 8, 8>}, {transform_indices = @transform_5, window_bounds = array<i64: 8, 8>}]} {
    %c0 = arith.constant 0 : index
    %c0_0 = arith.constant 0 : index
    %0 = vector.load %arg1[%c0, %c0_0] : memref<8x64xf32, #tpu.memory_space<vmem>>, vector<8x64xf32>
    %c0_1 = arith.constant 0 : index
    %c0_2 = arith.constant 0 : index
    %1 = vector.load %arg2[%c0_1, %c0_2] : memref<64x16xf32, #tpu.memory_space<vmem>>, vector<64x16xf32>
    %cst = arith.constant dense<0.000000e+00> : vector<8x16xf32>
    %2 = tpu.matmul %0, %1, %cst {dimension_numbers = #tpu.dot_dimension_numbers<[1], [0], [0], [1], [0, 0, 1, 1], [], []>} : vector<8x64xf32>, vector<64x16xf32>, vector<8x16xf32> -> vector<8x16xf32>
    %c0_3 = arith.constant 0 : index
    %c0_4 = arith.constant 0 : index
    %3 = vector.load %arg3[%c0_3, %c0_4] : memref<64x16xf32, #tpu.memory_space<vmem>>, vector<64x16xf32>
    %cst_5 = arith.constant dense<0.000000e+00> : vector<8x16xf32>
    %4 = tpu.matmul %0, %3, %cst_5 {dimension_numbers = #tpu.dot_dimension_numbers<[1], [0], [0], [1], [0, 0, 1, 1], [], []>} : vector<8x64xf32>, vector<64x16xf32>, vector<8x16xf32> -> vector<8x16xf32>
    %5 = vector.shape_cast %2 : vector<8x16xf32> to vector<1x8x16xf32>
    %6 = vector.shape_cast %4 : vector<8x16xf32> to vector<1x8x16xf32>
    %cst_6 = arith.constant dense<0.000000e+00> : vector<1x8x8xf32>
    %7 = tpu.matmul %6, %5, %cst_6 {dimension_numbers = #tpu.dot_dimension_numbers<[2], [2], [1], [1], [0, 0, 0, 1, 1, 1], [0], [0]>} : vector<1x8x16xf32>, vector<1x8x16xf32>, vector<1x8x8xf32> -> vector<1x8x8xf32>
    %c0_7 = arith.constant 0 : index
    %c0_8 = arith.constant 0 : index
    %8 = vector.load %arg4[%c0_7, %c0_8] : memref<8x8xf32, #tpu.memory_space<vmem>>, vector<8x8xf32>
    %9 = vector.shape_cast %8 : vector<8x8xf32> to vector<1x8x8xf32>
    %10 = arith.addf %7, %9 : vector<1x8x8xf32>
    %11 = arith.negf %10 : vector<1x8x8xf32>
    %12 = math.exp %11 : vector<1x8x8xf32>
    %cst_9 = arith.constant 1.000000e+00 : f32
    %13 = vector.broadcast %cst_9 : f32 to vector<1x8x8xf32>
    %14 = arith.addf %13, %12 : vector<1x8x8xf32>
    %15 = arith.divf %13, %14 : vector<1x8x8xf32>
    %16 = vector.shape_cast %15 : vector<1x8x8xf32> to vector<8x8xf32>
    %c0_10 = arith.constant 0 : index
    %c0_11 = arith.constant 0 : index
    %17 = vector.load %arg5[%c0_10, %c0_11] : memref<8x8xf32, #tpu.memory_space<vmem>>, vector<8x8xf32>
    %cst_12 = arith.constant dense<0.000000e+00> : vector<8x8xf32>
    %18 = tpu.matmul %16, %17, %cst_12 {dimension_numbers = #tpu.dot_dimension_numbers<[1], [0], [0], [1], [0, 0, 1, 1], [], []>} : vector<8x8xf32>, vector<8x8xf32>, vector<8x8xf32> -> vector<8x8xf32>
    %cst_13 = arith.constant dense<0xFF800000> : vector<8xf32>
    %19 = vector.multi_reduction <maximumf>, %18, %cst_13 [1] : vector<8x8xf32> to vector<8xf32>
    %20 = vector.shape_cast %19 : vector<8xf32> to vector<8x1xf32>
    %21 = vector.broadcast %20 : vector<8x1xf32> to vector<8x8xf32>
    %22 = arith.subf %18, %21 : vector<8x8xf32>
    %23 = math.exp %22 : vector<8x8xf32>
    %cst_14 = arith.constant dense<0.000000e+00> : vector<8xf32>
    %24 = vector.multi_reduction <add>, %23, %cst_14 [1] : vector<8x8xf32> to vector<8xf32>
    %25 = vector.shape_cast %24 : vector<8xf32> to vector<8x1xf32>
    %26 = tpu.reciprocal %25 {approx = true} : vector<8x1xf32> -> vector<8x1xf32>
    %27 = vector.broadcast %26 : vector<8x1xf32> to vector<8x8xf32>
    %28 = arith.mulf %23, %27 : vector<8x8xf32>
    %c0_15 = arith.constant 0 : index
    %c0_16 = arith.constant 0 : index
    %29 = vector.load %arg6[%c0_15, %c0_16] : memref<8x8xf32, #tpu.memory_space<vmem>>, vector<8x8xf32>
    tpu.vector_store %arg6[%c0_15, %c0_16], %28 {strides = array<i32>} : memref<8x8xf32, #tpu.memory_space<vmem>>, vector<8x8xf32>,
    return
  }
  func.func @transform_0(%arg0: i32) -> (i32, i32) {
    %c0_i32 = arith.constant 0 : i32
    %c0_i32_0 = arith.constant 0 : i32
    return %arg0, %c0_i32 : i32, i32
  }
  func.func @transform_1(%arg0: i32) -> (i32, i32) {
    %c0_i32 = arith.constant 0 : i32
    %c0_i32_0 = arith.constant 0 : i32
    %c0_i32_1 = arith.constant 0 : i32
    return %c0_i32, %c0_i32_0 : i32, i32
  }
  func.func @transform_2(%arg0: i32) -> (i32, i32) {
    %c0_i32 = arith.constant 0 : i32
    %c0_i32_0 = arith.constant 0 : i32
    %c0_i32_1 = arith.constant 0 : i32
    return %c0_i32, %c0_i32_0 : i32, i32
  }
  func.func @transform_3(%arg0: i32) -> (i32, i32) {
    %c0_i32 = arith.constant 0 : i32
    %c0_i32_0 = arith.constant 0 : i32
    %c0_i32_1 = arith.constant 0 : i32
    return %c0_i32, %c0_i32_0 : i32, i32
  }
  func.func @transform_4(%arg0: i32) -> (i32, i32) {
    %c0_i32 = arith.constant 0 : i32
    %c0_i32_0 = arith.constant 0 : i32
    %c0_i32_1 = arith.constant 0 : i32
    return %c0_i32, %c0_i32_0 : i32, i32
  }
  func.func @transform_5(%arg0: i32) -> (i32, i32) {
    %c0_i32 = arith.constant 0 : i32
    %c0_i32_0 = arith.constant 0 : i32
    return %arg0, %c0_i32 : i32, i32
  }
}

</mosaic_0001>

<bundles_post_ra>
// kernel: tpu_custom_call.1
= control target key start
LH: loop header
LB: loop body
LE: loop exit
PB: predicated region body
PF: predicated region fallthrough
CT: control target
= control target key end

     0   :  { %s748_s18 = smov 0   ;;  %s840_s0 = inlined_call_operand.vmem [shape: f32[16,64], index: 0, kind: input, shape index: {}]   ;;  %s841_s1 = inlined_call_operand.vmem [shape: f32[64,16], index: 1, kind: input, shape index: {}]   ;;  %s842_s2 = inlined_call_operand.vmem [shape: f32[64,16], index: 2, kind: input, shape index: {}]   ;;  %s843_s3 = inlined_call_operand.vmem [shape: f32[8,8], index: 3, kind: input, shape index: {}]   ;;  %s844_s4 = inlined_call_operand.vmem [shape: f32[8,8], index: 4, kind: input, shape index: {}]   ;;  %s845_s5 = inlined_call_operand.vmem [shape: f32[16,8], index: 5, kind: output, shape index: {}]  }
   0x1 LB: > { %s605_s19 = sadd.s32 4294967295, %s714_s18   ;;  %p609_p0 = scmp.ge.s32.totalorder %s714_s18, 1  ;;  %s714_s18 = sphi %s748_s18, %s15_s18  }
   0x2   : > { %p186_p1 = scmp.lt.s32.totalorder %s714_s18, 3 }
   0x4   : > { %p187_p2 = pnand %p609_p0, %p186_p1 }
   0x5   : > { %p762_p3 = scmp.lt.s32.totalorder (!%p187_p2), %s605_s19, 1 }
   0x6   : > { %190 = sbr.rel (%p187_p2) target bundleno = 957 (0x3bd), region = 40 }
   0xb   : > { %v228_v0 = vld [vmem:[%s841_s1 + $0x38] sm:$0xff]  ;;  %v716_v2 = vmov 0.0   ;;  %v227_v3 = vld [vmem:[%s841_s1 + $0x30] sm:$0xff]  ;;  %v226_v5 = vld [vmem:[%s841_s1 + $0x28] sm:$0xff]  ;;  %s848_s19 = smov (!%p762_p3, %s605_s19), 1  ;;  %vm717_vm0 = vmmov 0  }
   0xc   : > { %v310_v1 = vld [vmem:[%s842_s2 + $0x38] sm:$0xff]  ;;  %642 = vmatprep.subr.mxu0 %v716_v2  ;;  %661 = vmatprep.subr.mxu1 %v716_v2  ;;  %v309_v4 = vld [vmem:[%s842_s2 + $0x30] sm:$0xff]  ;;  %v308_v6 = vld [vmem:[%s842_s2 + $0x28] sm:$0xff]  ;;  %s610_s16 = sshll.u32 %s848_s19, 3  ;;  %vm229_vm1 = vcmask 523264   ;;  %vm382_vm2 = vcmask 130048  }
   0xd   : > { %643 = vmatpush3.msra.mxu0 %v228_v0  ;;  %662 = vmatpush3.msra.mxu1 %v310_v1  ;;  %v225_v7 = vld [vmem:[%s841_s1 + $0x20] sm:$0xff]  ;;  %v224_v9 = vld [vmem:[%s841_s1 + $0x18] sm:$0xff]  ;;  %v223_v11 = vld [vmem:[%s841_s1 + $0x10] sm:$0xff]  ;;  %s215_s27 = scalar_lea.vmem %s840_s0, %s610_s16  ;;  %vm466_vm3 = vcmask 64512   ;;  %s219_s15 = scalar_lea.vmem %s845_s5, %s610_s16 }
   0xe   : > { %644 = vmatprep.subr.mxu0 %v716_v2  ;;  %663 = vmatprep.subr.mxu1 %v716_v2  ;;  %v307_v8 = vld [vmem:[%s842_s2 + $0x20] sm:$0xff]  ;;  %v306_v10 = vld [vmem:[%s842_s2 + $0x18] sm:$0xff]  ;;  %v305_v12 = vld [vmem:[%s842_s2 + $0x10] sm:$0xff] }
   0xf   : > { %645 = vmatpush3.msra.mxu0 %v227_v3  ;;  %664 = vmatpush3.msra.mxu1 %v309_v4  ;;  %v222_v13 = vld [vmem:[%s841_s1 + $0x8] sm:$0xff]  ;;  %v221_v15 = vld [vmem:[%s841_s1] sm:$0xff] }
  0x10   : > { %646 = vmatprep.subr.mxu0 %v716_v2  ;;  %665 = vmatprep.subr.mxu1 %v716_v2  ;;  %v304_v14 = vld [vmem:[%s842_s2 + $0x8] sm:$0xff]  ;;  %v220_v16 = vld [vmem:[%s215_s27] sm:$0xff] }
  0x11   : > { %647 = vmatpush3.msra.mxu0 %v226_v5  ;;  %666 = vmatpush3.msra.mxu1 %v308_v6  ;;  %v303_v17 = vld [vmem:[%s842_s2] sm:$0xff] }
  0x12   : > { %648 = vmatprep.subr.mxu0 %v716_v2  ;;  %667 = vmatprep.subr.mxu1 %v716_v2  ;;  %v465_v22 = vld [vmem:[%s844_s4] sm:$0xff] }
  0x13   : > { %649 = vmatpush3.msra.mxu0 %v225_v7  ;;  %668 = vmatpush3.msra.mxu1 %v307_v8  ;;  %v381_v23 = vld [vmem:[%s843_s3] sm:$0xff] }
  0x14   : > { %650 = vmatprep.subr.mxu0 %v716_v2  ;;  %669 = vmatprep.subr.mxu1 %v716_v2 }
  0x15   : > { %651 = vmatpush3.msra.mxu0 %v224_v9  ;;  %670 = vmatpush3.msra.mxu1 %v306_v10 }
  0x16   : > { %652 = vmatprep.subr.mxu0 %v716_v2  ;;  %671 = vmatprep.subr.mxu1 %v716_v2 }
  0x17   : > { %653 = vmatpush3.msra.mxu0 %v223_v11  ;;  %672 = vmatpush3.msra.mxu1 %v305_v12 }
  0x18   : > { %654 = vmatprep.subr.mxu0 %v716_v2  ;;  %673 = vmatprep.subr.mxu1 %v716_v2 }
  0x19   : > { %655 = vmatpush3.msra.mxu0 %v222_v13  ;;  %658 = vmatprep.mubr.msk.f32.mxu0 %vm717_vm0, %v716_v2 }
  0x1a   : > { %656 = vmatprep.subr.mxu0 %v716_v2  ;;  %674 = vmatpush3.msra.mxu1 %v304_v14 }
  0x1b   : > { %657 = vmatpush3.msra.mxu0 %v221_v15  ;;  %675 = vmatprep.subr.mxu1 %v716_v2 }
  0x1c   : > { %659 = vmatmul.mubr.msk.f32.vlgmr.msra.gmra.mxu0 %vm229_vm1, %v220_v16  ;;  %676 = vmatpush3.msra.mxu1 %v303_v17 }
  0x1d   : > { %677 = vmatprep.mubr.msk.f32.mxu1 %vm717_vm0, %v716_v2  ;;  %680 = vmatprep.subr.mxu0 %v716_v2 }
  0x1e   : > { %678 = vmatmul.mubr.msk.f32.vlgmr.msra.gmra.mxu1 %vm229_vm1, %v220_v16  ;;  %682 = vmatprep.mubr.msk.f32.mxu0 %vm717_vm0, %v716_v2 }
  0x1f   : > { %685 = vmatprep.subr.mxu1 %v716_v2  ;;  %687 = vmatprep.mubr.msk.f32.mxu1 %vm717_vm0, %v716_v2 }
  0x20   : > { %686 = vmatpush3.msra.mxu1 %v465_v22 }
  0xdc   : > { %v299_v18 = vpop.f32.mrf.mxu0 }
  0xdd   : > { %681 = vmatpush3.xpose.msk.msra.mxu0 %vm382_vm2, %v299_v18 }
  0xde   : > { %v660_v19 = vpop.f32.mrf.mxu0  ;;  %v377_v20 = vpop.f32.mrf.mxu1 }
  0xe0   : > { %v679_v21 = vpop.f32.mrf.mxu1  ;;  %683 = vmatmul.mubr.msk.f32.vlgmr.msra.gmra.mxu0 %vm382_vm2, %v377_v20 }
 0x1a0   : > { %v455_v24 = vpop.f32.mrf.mxu0 }
 0x1a1   : > { %v456_v25 = vadd.f32 %v455_v24, %v381_v23 }
 0x1a2   : > { %v684_v26 = vpop.f32.mrf.mxu0 }
 0x1a3   : > { %v616_v27 = vmul.f32 -1.442695, %v456_v25 }
 0x1a5   : > { %700 = vpow2.f32 %v616_v27 }
 0x1b2   : > { %v701_v28 = vpop.eup %700 }
 0x1b3   : > { %v462_v29 = vadd.f32 1.0, %v701_v28 }
 0x1b5   : > { %702 = vrcp.f32 %v462_v29 }
 0x1c2   : > { %v703_v30 = vpop.eup %702 }
 0x1c3   : > { %688 = vmatmul.mubr.msk.f32.vlgmr.msra.gmra.mxu1 %vm466_vm3, %v703_v30 }
 0x283   : > { %v536_v31 = vpop.f32.mrf.mxu1 }
 0x284   : > { %v540_v32 = vsel %vm466_vm3, %v536_v31, -inf }
 0x285   : > { %541 = vmax.xlane.f32.xlu0 %v540_v32  ;;  %v689_v33 = vpop.f32.mrf.mxu1 }
 0x30e   : > { %v542_v34 = vpop.xlane.xlu0 %541 }
 0x30f   : > { %v543_v35 = vsub.f32 %v536_v31, %v542_v34 }
 0x311   : > { %v544_v36 = vmul.f32 1.442695, %v543_v35 }
 0x313   : > { %704 = vpow2.f32 %v544_v36 }
 0x320   : > { %v705_v37 = vpop.eup %704 }
 0x321   : > { %v546_v38 = vsel %vm466_vm3, %v705_v37, 0.0 }
 0x322   : > { %547 = vadd.xlane.f32.xlu0 %v546_v38 }
 0x3ab   : > { %v548_v39 = vpop.xlane.xlu0 %547 }
 0x3ac   : > { %706 = vrcp.f32 %v548_v39 }
 0x3b9   : > { %v707_v40 = vpop.eup %706 }
 0x3ba   : > { %v550_v41 = vmul.f32 %v707_v40, %v705_v37 }
 0x3bc   : > { %551 = vst.msk [vmem:[%s219_s15] sm:$0xff] %vm466_vm3, %v550_v41 }
 0x3bd PF: > { %s15_s18 = sadd.s32 1, %s714_s18  }
 0x3be   : > { %p12_p4 = scmp.ge.s32.totalorder %s15_s18, 4  }
 0x3c0   :  { %14 = sbr.rel (!%p12_p4) target bundleno = 1 (0x1), region = 70 }

</bundles_post_ra>
